<compile_context>
chip_gen: v6e
topology: v6e:2x2x1
jax: 0.10.0
libtpu: 0.0.40
codegen_flags: <defaults>
</compile_context>

<pallas_src>
import numpy as np
import jax
import jax.numpy as jnp
from jax import lax
from jax.experimental import pallas as pl
from jax.experimental.pallas import tpu as pltpu


def _gaussian_kernel1d(kernel_size: int, sigma: float) -> np.ndarray:
    """Matches torchvision _get_gaussian_kernel1d."""
    half = (kernel_size - 1) * 0.5
    x = np.linspace(-half, half, kernel_size, dtype=np.float64)
    pdf = np.exp(-0.5 * (x / sigma) ** 2)
    return (pdf / pdf.sum()).astype(np.float32)


def _reflect_index(i: int, n: int) -> int:
    """numpy/torch 'reflect' (no edge repeat); valid while the overhang < n."""
    if i < 0:
        i = -i
    if i >= n:
        i = 2 * (n - 1) - i
    return i


def _band_matrix(n: int, weights: np.ndarray) -> np.ndarray:
    """M[src, out] such that (x @ M)[..., out] is the reflect-padded 1D Gaussian conv."""
    k = len(weights)
    p = k // 2
    m = np.zeros((n, n), dtype=np.float32)
    for out_i in range(n):
        for t in range(k):
            src = _reflect_index(out_i - p + t, n)
            m[src, out_i] += float(weights[t])
    return m


def _blur_kernel(x_ref, mh_ref, mw_ref, o_ref):
    """x_ref: (bn, H, W); mh_ref: (H, H) row mixing; mw_ref: (W, W) column mixing."""
    x = x_ref[...].astype(jnp.float32)                              # (bn, H, W)
    bn = x.shape[0]
    mw_b = jnp.broadcast_to(mw_ref[...], (bn,) + mw_ref.shape)      # (bn, W, W)
    mh_b = jnp.broadcast_to(mh_ref[...], (bn,) + mh_ref.shape)      # (bn, H, H)

    # Horizontal (W) pass on the MXU: tmp[n,h,v] = sum_w x[n,h,w] * MW[w,v]
    tmp = lax.dot_general(
        x, mw_b, (((2,), (1,)), ((0,), (0,))),
        preferred_element_type=jnp.float32,
        precision=lax.Precision.HIGHEST)                            # (bn, H, W)

    # Vertical (H) pass on the MXU: out[n,h,w] = sum_k MH[h,k] * tmp[n,k,w]
    out = lax.dot_general(
        mh_b, tmp, (((2,), (1,)), ((0,), (0,))),
        preferred_element_type=jnp.float32,
        precision=lax.Precision.HIGHEST)                            # (bn, H, W)

    o_ref[...] = out.astype(o_ref.dtype)


def _vmem_capacity_bytes() -> int:
    try:
        cap = getattr(pltpu.get_tpu_info(), "vmem_capacity_bytes", None)
        if cap:
            return int(cap)
    except Exception:
        pass
    return 64 * 1024 * 1024          # conservative default (v7x per-core VMEM)


def _pick_block_planes(N: int, H: int, W: int, itemsize: int, vmem_limit: int) -> int:
    """Planes per grid step, sized from a generation-aware VMEM budget."""
    per_plane = (4 * H * W * itemsize          # double-buffered input + output tiles
                 + 12 * H * W                  # f32 x / tmp / out intermediates
                 + 4 * (H * H + W * W))        # broadcast band-matrix rows
    budget = max(vmem_limit // 2, 1 << 20)
    bn = max(1, budget // max(per_plane, 1))
    bn = min(bn, 256)                          # keep the batched-matmul unroll modest
    # Guarantee >=2 (target 4) grid steps: lets v7x shard planes over both TensorCores
    # and gives the BlockSpec pipeline DMAs to overlap.
    if N >= 4:
        bn = min(bn, pl.cdiv(N, 4))
    elif N >= 2:
        bn = min(bn, pl.cdiv(N, 2))
    return max(1, int(bn))


def threed_gaussian_blur(X, kernel_size: int, sigma: float):
    """Applies the ThreedGaussianBlur forward pass."""
    orig_shape = X.shape
    H, W = int(X.shape[-2]), int(X.shape[-1])
    kernel_size = int(kernel_size)
    assert kernel_size % 2 == 1, "torchvision GaussianBlur requires odd kernel_size"
    p = kernel_size // 2
    assert p < H and p < W, "reflect padding requires kernel_size//2 < H and < W"

    w1d = _gaussian_kernel1d(kernel_size, float(sigma))
    # Runtime inputs (not baked constants): a new sigma only needs new tiny host-side
    # matrices, not a kernel recompile.
    mw = jnp.asarray(_band_matrix(W, w1d))          # (W, W): tmp = x @ MW
    mh = jnp.asarray(_band_matrix(H, w1d).T)        # (H, H): out = MH @ tmp

    # Depthwise conv: every channel of every leading element is an independent plane.
    x = X.reshape((-1, H, W))                        # free reshape, native layout
    N = int(x.shape[0])

    vmem_cap = _vmem_capacity_bytes()
    vmem_limit = int(vmem_cap * 3 // 4)              # ~96 MiB on v5e/v6e, ~48 MiB on v7x
    bn = _pick_block_planes(N, H, W, X.dtype.itemsize, vmem_limit)
    grid = (pl.cdiv(N, bn),)
    # TODO(synk): add H-row tiling with a (kernel_size-1)-row halo for planes so large
    # that a single (1, H, W) block does not fit the VMEM budget.

    out = pl.pallas_call(
        _blur_kernel,
        out_shape=jax.ShapeDtypeStruct((N, H, W), X.dtype),
        grid=grid,
        in_specs=[
            pl.BlockSpec((bn, H, W), lambda i: (i, 0, 0)),
            pl.BlockSpec((H, H), lambda i: (0, 0)),
            pl.BlockSpec((W, W), lambda i: (0, 0)),
        ],
        out_specs=pl.BlockSpec((bn, H, W), lambda i: (i, 0, 0)),
        compiler_params=pltpu.CompilerParams(
            dimension_semantics=("parallel",),
            vmem_limit_bytes=vmem_limit,
        ),
    )(x, mh, mw)

    return out.reshape(orig_shape)


def _reference_blur(X, kernel_size, sigma):
    """Pure-JAX reference (reflect pad + separable taps) for a sanity check."""
    H, W = X.shape[-2], X.shape[-1]
    x = X.reshape((-1, H, W)).astype(jnp.float32)
    k = int(kernel_size)
    p = k // 2
    xp = jnp.pad(x, ((0, 0), (p, p), (p, p)), mode="reflect")
    w = _gaussian_kernel1d(k, sigma)
    tmp = sum(w[i] * xp[:, :, i:i + W] for i in range(k))
    out = sum(w[i] * tmp[:, i:i + H, :] for i in range(k))
    return out.astype(X.dtype).reshape(X.shape)


if __name__ == "__main__":
    key = jax.random.PRNGKey(0)
    k_data, k_sigma = jax.random.split(key)

    # 5D input consistent with the module's reshape(-1, C, H, W).
    B, T, C, H, W = 2, 3, 4, 16, 16
    X = jax.random.normal(k_data, (B, T, C, H, W), dtype=jnp.float32)

    kernel_size = 5
    # GaussianBlur(sigma=(0.1, 2.0)) samples sigma uniformly per forward call.
    # TODO(synk): sigma is sampled once here (deterministically); torchvision resamples
    # each call — with this kernel a new sigma only changes the tiny band-matrix inputs.
    sigma = float(jax.random.uniform(k_sigma, (), minval=0.1, maxval=2.0))

    y = threed_gaussian_blur(X, kernel_size, sigma)
    y = jax.block_until_ready(y)

    y_ref = _reference_blur(X, kernel_size, sigma)
    assert y.shape == X.shape
    np.testing.assert_allclose(np.asarray(y), np.asarray(y_ref), rtol=1e-4, atol=1e-4)

    print("KERNEL_OK")
</pallas_src>

<mosaic_0001>
module attributes {stable_mosaic.version = 11 : i64} {
  func.func @_blur_kernel(%arg0: i32, %arg1: memref<6x16x16xf32, #tpu.memory_space<vmem>>, %arg2: memref<16x16xf32, #tpu.memory_space<vmem>>, %arg3: memref<16x16xf32, #tpu.memory_space<vmem>>, %arg4: memref<6x16x16xf32, #tpu.memory_space<vmem>>) attributes {dimension_semantics = [#tpu.dimension_semantics<parallel>], iteration_bounds = array<i64: 4>, scalar_prefetch = 0 : i64, scratch_operands = 0 : i64, tpu.core_type = #tpu.core_type<tc>, window_params = [{transform_indices = @transform_0, window_bounds = array<i64: 6, 16, 16>}, {pipeline_mode = #tpu.pipeline_mode<synchronous>, transform_indices = @transform_1, window_bounds = array<i64: 16, 16>}, {pipeline_mode = #tpu.pipeline_mode<synchronous>, transform_indices = @transform_2, window_bounds = array<i64: 16, 16>}, {transform_indices = @transform_3, window_bounds = array<i64: 6, 16, 16>}]} {
    %c0 = arith.constant 0 : index
    %c0_0 = arith.constant 0 : index
    %c0_1 = arith.constant 0 : index
    %0 = vector.load %arg1[%c0, %c0_0, %c0_1] : memref<6x16x16xf32, #tpu.memory_space<vmem>>, vector<6x16x16xf32>
    %c0_2 = arith.constant 0 : index
    %c0_3 = arith.constant 0 : index
    %1 = vector.load %arg3[%c0_2, %c0_3] : memref<16x16xf32, #tpu.memory_space<vmem>>, vector<16x16xf32>
    %2 = vector.shape_cast %1 : vector<16x16xf32> to vector<1x16x16xf32>
    %3 = vector.broadcast %2 : vector<1x16x16xf32> to vector<6x16x16xf32>
    %c0_4 = arith.constant 0 : index
    %c0_5 = arith.constant 0 : index
    %4 = vector.load %arg2[%c0_4, %c0_5] : memref<16x16xf32, #tpu.memory_space<vmem>>, vector<16x16xf32>
    %5 = vector.shape_cast %4 : vector<16x16xf32> to vector<1x16x16xf32>
    %6 = vector.broadcast %5 : vector<1x16x16xf32> to vector<6x16x16xf32>
    %cst = arith.constant dense<0.000000e+00> : vector<6x16x16xf32>
    %7 = tpu.matmul %0, %3, %cst {dimension_numbers = #tpu.dot_dimension_numbers<[2], [1], [1], [2], [0, 0, 0, 1, 1, 2], [0], [0]>, precision = #tpu.contract_precision<fp32>} : vector<6x16x16xf32>, vector<6x16x16xf32>, vector<6x16x16xf32> -> vector<6x16x16xf32>
    %cst_6 = arith.constant dense<0.000000e+00> : vector<6x16x16xf32>
    %8 = tpu.matmul %6, %7, %cst_6 {dimension_numbers = #tpu.dot_dimension_numbers<[2], [1], [1], [2], [0, 0, 0, 1, 1, 2], [0], [0]>, precision = #tpu.contract_precision<fp32>} : vector<6x16x16xf32>, vector<6x16x16xf32>, vector<6x16x16xf32> -> vector<6x16x16xf32>
    %c0_7 = arith.constant 0 : index
    %c0_8 = arith.constant 0 : index
    %c0_9 = arith.constant 0 : index
    %9 = vector.load %arg4[%c0_7, %c0_8, %c0_9] : memref<6x16x16xf32, #tpu.memory_space<vmem>>, vector<6x16x16xf32>
    tpu.vector_store %arg4[%c0_7, %c0_8, %c0_9], %8 {strides = array<i32>} : memref<6x16x16xf32, #tpu.memory_space<vmem>>, vector<6x16x16xf32>,
    return
  }
  func.func @transform_0(%arg0: i32) -> (i32, i32, i32) {
    %c0_i32 = arith.constant 0 : i32
    %c0_i32_0 = arith.constant 0 : i32
    %c0_i32_1 = arith.constant 0 : i32
    return %arg0, %c0_i32, %c0_i32_0 : i32, i32, i32
  }
  func.func @transform_1(%arg0: i32) -> (i32, i32) {
    %c0_i32 = arith.constant 0 : i32
    %c0_i32_0 = arith.constant 0 : i32
    %c0_i32_1 = arith.constant 0 : i32
    return %c0_i32, %c0_i32_0 : i32, i32
  }
  func.func @transform_2(%arg0: i32) -> (i32, i32) {
    %c0_i32 = arith.constant 0 : i32
    %c0_i32_0 = arith.constant 0 : i32
    %c0_i32_1 = arith.constant 0 : i32
    return %c0_i32, %c0_i32_0 : i32, i32
  }
  func.func @transform_3(%arg0: i32) -> (i32, i32, i32) {
    %c0_i32 = arith.constant 0 : i32
    %c0_i32_0 = arith.constant 0 : i32
    %c0_i32_1 = arith.constant 0 : i32
    return %arg0, %c0_i32, %c0_i32_0 : i32, i32, i32
  }
}

</mosaic_0001>

<bundles_post_ra>
// kernel: tpu_custom_call.1
= control target key start
LH: loop header
LB: loop body
LE: loop exit
PB: predicated region body
PF: predicated region fallthrough
CT: control target
= control target key end

     0   :  { %s7173_s12 = smov 0   ;;  %s7677_s0 = inlined_call_operand.vmem [shape: f32[24,16,16], index: 0, kind: input, shape index: {}]   ;;  %s7678_s1 = inlined_call_operand.vmem [shape: f32[16,16], index: 1, kind: input, shape index: {}]   ;;  %s7679_s2 = inlined_call_operand.vmem [shape: f32[16,16], index: 2, kind: input, shape index: {}]   ;;  %s7680_s3 = inlined_call_operand.vmem [shape: f32[24,16,16], index: 3, kind: output, shape index: {}]  }
   0x1 LB: > { %s6332_s13 = sadd.s32 4294967295, %s7151_s12   ;;  %p6336_p0 = scmp.ge.s32.totalorder %s7151_s12, 1  ;;  %s7151_s12 = sphi %s7173_s12, %s13_s12  }
   0x2   : > { %p139_p1 = scmp.lt.s32.totalorder %s7151_s12, 5 }
   0x4   : > { %p140_p2 = pnand %p6336_p0, %p139_p1 }
   0x5   : > { %s165_s18 = smul.u32 (!%p140_p2), 6, %s6332_s13 }
   0x6   : > { %143 = sbr.rel (%p140_p2) target bundleno = 547 (0x223), region = 32 }
   0x7   : > { %p166_p3 = scmp.lt.s32.totalorder (!%p140_p2), %s165_s18, 23 }
   0xb   : > { %v192_v0 = vld [vmem:[%s7679_s2 + $0x8] sm:$0xff]  ;;  %v191_v1 = vld [vmem:[%s7679_s2] sm:$0xff]  ;;  %s7682_s18 = smov (!%p166_p3, %s165_s18), 23  ;;  %vm195_vm0 = vcmask 130048  }
   0xc   : > { %v7187_v2 = vand.u32 4294901760, %v192_v0  ;;  %v7189_v3 = vand.u32 4294901760, %v191_v1  ;;  %s6343_s19 = sshll.u32 %s7682_s18, 4 }
   0xd   : > { %s7219_s22 = scalar_lea.vmem %s7677_s0, %s6343_s19  ;;  %s7648_s29 = scalar_lea.vmem %s7680_s3, %s6343_s19 }
   0xe   : > { %6633 = vmatprep.subr.mxu0 %v7187_v2  ;;  %v7193_v4 = vsub.f32 %v192_v0, %v7187_v2  ;;  %v7196_v5 = vsub.f32 %v191_v1, %v7189_v3  ;;  %v179_v10 = vld [vmem:[%s7219_s22] sm:$0xff]  ;;  %v180_v11 = vld [vmem:[%s7219_s22 + $0x8] sm:$0xff]  ;;  %v181_v12 = vld [vmem:[%s7219_s22 + $0x10] sm:$0xff] }
   0xf   : > { %6634 = vmatpush3.msra.mxu0 %v7187_v2  ;;  %v197_v15 = vsel %vm195_vm0, %v179_v10, 0  ;;  %v200_v16 = vsel %vm195_vm0, %v180_v11, 0  ;;  %v182_v17 = vld [vmem:[%s7219_s22 + $0x18] sm:$0xff]  ;;  %v705_v20 = vsel %vm195_vm0, %v181_v12, 0  ;;  %v183_v37 = vld [vmem:[%s7219_s22 + $0x20] sm:$0xff]  ;;  %v184_v39 = vld [vmem:[%s7219_s22 + $0x28] sm:$0xff] }
  0x10   : > { %v7202_v6 = vand.u32 4294901760, %v7193_v4  ;;  %6635 = vmatprep.subr.mxu0 %v7189_v3  ;;  %v7206_v7 = vand.u32 4294901760, %v7196_v5  ;;  %v269_v18 = vand.u32 4294901760, %v197_v15  ;;  %v279_v19 = vand.u32 4294901760, %v200_v16  ;;  %v185_v51 = vld [vmem:[%s7219_s22 + $0x30] sm:$0xff]  ;;  %v186_v53 = vld [vmem:[%s7219_s22 + $0x38] sm:$0xff] }
  0x11   : > { %6636 = vmatpush3.msra.mxu0 %v7189_v3  ;;  %v708_v21 = vsel %vm195_vm0, %v182_v17, 0  ;;  %v7236_v24 = vand.u32 4294901760, %v705_v20  ;;  %v1213_v40 = vsel %vm195_vm0, %v183_v37, 0  ;;  %v1216_v42 = vsel %vm195_vm0, %v184_v39, 0  ;;  %v187_v1 = vld [vmem:[%s7219_s22 + $0x40] sm:$0xff] }
  0x12   : > { %v321_v8 = vsub.f32 %v7193_v4, %v7202_v6  ;;  %v328_v9 = vsub.f32 %v7196_v5, %v7206_v7  ;;  %6647 = vmatprep.subr.mxu0 %v7193_v4  ;;  %v270_v22 = vsub.f32 %v197_v15, %v269_v18  ;;  %6644 = vmatprep.mubr.f32.mxu1 %v269_v18  ;;  %v7240_v27 = vand.u32 4294901760, %v708_v21 }
  0x13   : > { %v280_v23 = vsub.f32 %v200_v16, %v279_v19  ;;  %v778_v30 = vsub.f32 %v705_v20, %v7236_v24  ;;  %v7267_v44 = vand.u32 4294901760, %v1213_v40  ;;  %v7272_v45 = vand.u32 4294901760, %v1216_v42 }
  0x14   : > { %v7225_v13 = vand.u32 4294901760, %v321_v8  ;;  %v7227_v14 = vand.u32 4294901760, %v328_v9  ;;  %v271_v25 = vand.u32 4294901760, %v270_v22  ;;  %v788_v33 = vsub.f32 %v708_v21, %v7240_v27  ;;  %v188_v9 = vld [vmem:[%s7219_s22 + $0x48] sm:$0xff] }
  0x15   : > { %v281_v26 = vand.u32 4294901760, %v280_v23  ;;  %v779_v34 = vand.u32 4294901760, %v778_v30  ;;  %v1286_v46 = vsub.f32 %v1213_v40, %v7267_v44  ;;  %v1296_v47 = vsub.f32 %v1216_v42, %v7272_v45 }
  0x16   : > { %6640 = vmatprep.subr.mxu1 %v7225_v13  ;;  %v272_v28 = vsub.f32 %v270_v22, %v271_v25  ;;  %v789_v35 = vand.u32 4294901760, %v788_v33  ;;  %v1721_v54 = vsel %vm195_vm0, %v185_v51, 0  ;;  %v1724_v56 = vsel %vm195_vm0, %v186_v53, 0 }
  0x17   : > { %6641 = vmatpush3.msra.mxu1 %v7225_v13  ;;  %v282_v29 = vsub.f32 %v280_v23, %v281_v26  ;;  %v780_v36 = vsub.f32 %v778_v30, %v779_v34  ;;  %v1287_v48 = vand.u32 4294901760, %v1286_v46  ;;  %v1297_v49 = vand.u32 4294901760, %v1296_v47 }
  0x18   : > { %6642 = vmatprep.subr.mxu1 %v7227_v14  ;;  %v273_v31 = vand.u32 4294901760, %v272_v28  ;;  %v790_v38 = vsub.f32 %v788_v33, %v789_v35  ;;  %v7307_v58 = vand.u32 4294901760, %v1721_v54  ;;  %v7312_v59 = vand.u32 4294901760, %v1724_v56 }
  0x19   : > { %6643 = vmatpush3.msra.mxu1 %v7227_v14  ;;  %v283_v32 = vand.u32 4294901760, %v282_v29  ;;  %v781_v41 = vand.u32 4294901760, %v780_v36  ;;  %v1288_v50 = vsub.f32 %v1286_v46, %v1287_v48  ;;  %v1298_v52 = vsub.f32 %v1296_v47, %v1297_v49 }
  0x1a   : > { %6645 = vmatmul.mubr.f32.vlgmr.msra.gmra.mxu1 %v279_v19  ;;  %6654 = vmatprep.subr.mxu1 %v7187_v2  ;;  %v791_v43 = vand.u32 4294901760, %v790_v38  ;;  %v1794_v60 = vsub.f32 %v1721_v54, %v7307_v58  ;;  %v1804_v61 = vsub.f32 %v1724_v56, %v7312_v59  ;;  %v2229_v10 = vsel %vm195_vm0, %v187_v1, 0 }
  0x1b   : > { %6655 = vmatpush3.msra.mxu1 %v7187_v2  ;;  %6658 = vmatprep.mubr.f32.mxu1 %v271_v25  ;;  %v1289_v55 = vand.u32 4294901760, %v1288_v50  ;;  %v1299_v57 = vand.u32 4294901760, %v1298_v52  ;;  %v2232_v12 = vsel %vm195_vm0, %v188_v9, 0  ;;  %v7347_v16 = vand.u32 4294901760, %v2229_v10  ;;  %v190_v25 = vld [vmem:[%s7219_s22 + $0x58] sm:$0xff] }
  0x1c   : > { %6656 = vmatprep.subr.mxu1 %v7189_v3  ;;  %6637 = vmatprep.mubr.f32.mxu0 %v273_v31  ;;  %v1795_v62 = vand.u32 4294901760, %v1794_v60  ;;  %v1805_v63 = vand.u32 4294901760, %v1804_v61  ;;  %v7352_v17 = vand.u32 4294901760, %v2232_v12  ;;  %v2740_v28 = vsel %vm195_vm0, %v190_v25, 0 }
  0x1d   : > { %6657 = vmatpush3.msra.mxu1 %v7189_v3  ;;  %6638 = vmatmul.mubr.f32.vlgmr.msra.gmra.mxu0 %v283_v32  ;;  %v7392_v31 = vand.u32 4294901760, %v2740_v28 }
  0x1e   : > { %6659 = vmatmul.mubr.f32.vlgmr.msra.gmra.mxu1 %v281_v26  ;;  %6668 = vmatprep.subr.mxu1 %v7187_v2  ;;  %v1796_v0 = vsub.f32 %v1794_v60, %v1795_v62  ;;  %v1806_v8 = vsub.f32 %v1804_v61, %v1805_v63 }
  0x1f   : > { %6669 = vmatpush3.msra.mxu1 %v7187_v2  ;;  %6648 = vmatpush3.msra.mxu0 %v7193_v4 }
  0x20   : > { %6670 = vmatprep.subr.mxu1 %v7189_v3  ;;  %6651 = vmatprep.mubr.f32.mxu0 %v270_v22  ;;  %v1797_v11 = vand.u32 4294901760, %v1796_v0  ;;  %v1807_v15 = vand.u32 4294901760, %v1806_v8 }
  0x21   : > { %6649 = vmatprep.subr.mxu0 %v7196_v5  ;;  %6671 = vmatpush3.msra.mxu1 %v7189_v3 }
  0x22   : > { %6650 = vmatpush3.msra.mxu0 %v7196_v5  ;;  %6672 = vmatprep.mubr.f32.mxu1 %v269_v18 }
  0x23   : > { %6652 = vmatmul.mubr.f32.vlgmr.msra.gmra.mxu0 %v280_v23  ;;  %6661 = vmatprep.subr.mxu0 %v7202_v6  ;;  %v189_v23 = vld [vmem:[%s7219_s22 + $0x50] sm:$0xff] }
  0x24   : > { %6662 = vmatpush3.msra.mxu0 %v7202_v6  ;;  %6665 = vmatprep.mubr.f32.mxu0 %v269_v18  ;;  %v2302_v18 = vsub.f32 %v2229_v10, %v7347_v16  ;;  %v2737_v26 = vsel %vm195_vm0, %v189_v23, 0 }
  0x25   : > { %6663 = vmatprep.subr.mxu0 %v7206_v7  ;;  %6673 = vmatmul.mubr.f32.vlgmr.msra.gmra.mxu1 %v279_v19 }
  0x26   : > { %6664 = vmatpush3.msra.mxu0 %v7206_v7  ;;  %6682 = vmatprep.subr.mxu1 %v7225_v13  ;;  %v2303_v20 = vand.u32 4294901760, %v2302_v18 }
  0x27   : > { %6666 = vmatmul.mubr.f32.vlgmr.msra.gmra.mxu0 %v279_v19  ;;  %6675 = vmatprep.subr.mxu0 %v7187_v2  ;;  %v2312_v19 = vsub.f32 %v2232_v12, %v7352_v17 }
  0x28   : > { %6676 = vmatpush3.msra.mxu0 %v7187_v2  ;;  %6683 = vmatpush3.msra.mxu1 %v7225_v13  ;;  %v2304_v22 = vsub.f32 %v2302_v18, %v2303_v20 }
  0x29   : > { %6677 = vmatprep.subr.mxu0 %v7189_v3  ;;  %6684 = vmatprep.subr.mxu1 %v7227_v14  ;;  %v2313_v21 = vand.u32 4294901760, %v2312_v19 }
  0x2a   : > { %6678 = vmatpush3.msra.mxu0 %v7189_v3  ;;  %6679 = vmatprep.mubr.f32.mxu0 %v781_v41 }
  0x2b   : > { %6685 = vmatpush3.msra.mxu1 %v7227_v14  ;;  %6686 = vmatprep.mubr.f32.mxu1 %v7236_v24 }
  0x2c   : > { %6680 = vmatmul.mubr.f32.vlgmr.msra.gmra.mxu0 %v791_v43  ;;  %6687 = vmatmul.mubr.f32.vlgmr.msra.gmra.mxu1 %v7240_v27 }
  0x2d   : > { %6689 = vmatprep.subr.mxu0 %v7193_v4  ;;  %6696 = vmatprep.subr.mxu1 %v7187_v2 }
  0x2e   : > { %6690 = vmatpush3.msra.mxu0 %v7193_v4  ;;  %6697 = vmatpush3.msra.mxu1 %v7187_v2 }
  0x2f   : > { %6691 = vmatprep.subr.mxu0 %v7196_v5  ;;  %6698 = vmatprep.subr.mxu1 %v7189_v3 }
  0x30   : > { %6692 = vmatpush3.msra.mxu0 %v7196_v5  ;;  %6693 = vmatprep.mubr.f32.mxu0 %v778_v30  ;;  %v7387_v30 = vand.u32 4294901760, %v2737_v26 }
  0x31   : > { %6699 = vmatpush3.msra.mxu1 %v7189_v3  ;;  %6700 = vmatprep.mubr.f32.mxu1 %v779_v34 }
  0x32   : > { %6694 = vmatmul.mubr.f32.vlgmr.msra.gmra.mxu0 %v788_v33  ;;  %6701 = vmatmul.mubr.f32.vlgmr.msra.gmra.mxu1 %v789_v35  ;;  %v2810_v32 = vsub.f32 %v2737_v26, %v7387_v30  ;;  %v2820_v33 = vsub.f32 %v2740_v28, %v7392_v31 }
  0x33   : > { %6703 = vmatprep.subr.mxu0 %v7202_v6  ;;  %6710 = vmatprep.subr.mxu1 %v7187_v2 }
  0x34   : > { %6704 = vmatpush3.msra.mxu0 %v7202_v6  ;;  %6711 = vmatpush3.msra.mxu1 %v7187_v2  ;;  %v2811_v34 = vand.u32 4294901760, %v2810_v32  ;;  %v2821_v35 = vand.u32 4294901760, %v2820_v33 }
  0x35   : > { %6705 = vmatprep.subr.mxu0 %v7206_v7  ;;  %6712 = vmatprep.subr.mxu1 %v7189_v3 }
  0x36   : > { %6706 = vmatpush3.msra.mxu0 %v7206_v7  ;;  %6707 = vmatprep.mubr.f32.mxu0 %v7236_v24  ;;  %v2812_v36 = vsub.f32 %v2810_v32, %v2811_v34  ;;  %v2822_v37 = vsub.f32 %v2820_v33, %v2821_v35 }
  0x37   : > { %6713 = vmatpush3.msra.mxu1 %v7189_v3  ;;  %6714 = vmatprep.mubr.f32.mxu1 %v7236_v24  ;;  %v2314_v24 = vsub.f32 %v2312_v19, %v2313_v21 }
  0x38   : > { %6708 = vmatmul.mubr.f32.vlgmr.msra.gmra.mxu0 %v7240_v27  ;;  %6715 = vmatmul.mubr.f32.vlgmr.msra.gmra.mxu1 %v7240_v27  ;;  %v2305_v27 = vand.u32 4294901760, %v2304_v22  ;;  %v2813_v38 = vand.u32 4294901760, %v2812_v36  ;;  %v2823_v39 = vand.u32 4294901760, %v2822_v37 }
  0x39   : > { %6717 = vmatprep.subr.mxu0 %v7187_v2  ;;  %6724 = vmatprep.subr.mxu1 %v7225_v13  ;;  %v2315_v29 = vand.u32 4294901760, %v2314_v24 }
  0x3a   : > { %6718 = vmatpush3.msra.mxu0 %v7187_v2  ;;  %6725 = vmatpush3.msra.mxu1 %v7225_v13 }
  0x3b   : > { %6719 = vmatprep.subr.mxu0 %v7189_v3  ;;  %6726 = vmatprep.subr.mxu1 %v7227_v14 }
  0x3c   : > { %6720 = vmatpush3.msra.mxu0 %v7189_v3  ;;  %6721 = vmatprep.mubr.f32.mxu0 %v1289_v55 }
  0x3d   : > { %6727 = vmatpush3.msra.mxu1 %v7227_v14  ;;  %6728 = vmatprep.mubr.f32.mxu1 %v7267_v44 }
  0x3e   : > { %6722 = vmatmul.mubr.f32.vlgmr.msra.gmra.mxu0 %v1299_v57  ;;  %6729 = vmatmul.mubr.f32.vlgmr.msra.gmra.mxu1 %v7272_v45 }
  0x3f   : > { %6731 = vmatprep.subr.mxu0 %v7193_v4  ;;  %6738 = vmatprep.subr.mxu1 %v7187_v2 }
  0x40   : > { %6732 = vmatpush3.msra.mxu0 %v7193_v4  ;;  %6739 = vmatpush3.msra.mxu1 %v7187_v2 }
  0x41   : > { %6733 = vmatprep.subr.mxu0 %v7196_v5  ;;  %6740 = vmatprep.subr.mxu1 %v7189_v3 }
  0x42   : > { %6734 = vmatpush3.msra.mxu0 %v7196_v5  ;;  %6735 = vmatprep.mubr.f32.mxu0 %v1286_v46 }
  0x43   : > { %6741 = vmatpush3.msra.mxu1 %v7189_v3  ;;  %6742 = vmatprep.mubr.f32.mxu1 %v1287_v48 }
  0x44   : > { %6736 = vmatmul.mubr.f32.vlgmr.msra.gmra.mxu0 %v1296_v47  ;;  %6743 = vmatmul.mubr.f32.vlgmr.msra.gmra.mxu1 %v1297_v49 }
  0x45   : > { %6745 = vmatprep.subr.mxu0 %v7202_v6  ;;  %6752 = vmatprep.subr.mxu1 %v7187_v2 }
  0x46   : > { %6746 = vmatpush3.msra.mxu0 %v7202_v6  ;;  %6753 = vmatpush3.msra.mxu1 %v7187_v2 }
  0x47   : > { %6747 = vmatprep.subr.mxu0 %v7206_v7  ;;  %6754 = vmatprep.subr.mxu1 %v7189_v3 }
  0x48   : > { %6748 = vmatpush3.msra.mxu0 %v7206_v7  ;;  %6749 = vmatprep.mubr.f32.mxu0 %v7267_v44 }
  0x49   : > { %6755 = vmatpush3.msra.mxu1 %v7189_v3  ;;  %6756 = vmatprep.mubr.f32.mxu1 %v7267_v44 }
  0x4a   : > { %6750 = vmatmul.mubr.f32.vlgmr.msra.gmra.mxu0 %v7272_v45  ;;  %6757 = vmatmul.mubr.f32.vlgmr.msra.gmra.mxu1 %v7272_v45 }
  0x4b   : > { %6759 = vmatprep.subr.mxu0 %v7187_v2  ;;  %6766 = vmatprep.subr.mxu1 %v7225_v13 }
  0x4c   : > { %6760 = vmatpush3.msra.mxu0 %v7187_v2  ;;  %6767 = vmatpush3.msra.mxu1 %v7225_v13 }
  0x4d   : > { %6761 = vmatprep.subr.mxu0 %v7189_v3  ;;  %6768 = vmatprep.subr.mxu1 %v7227_v14 }
  0x4e   : > { %6762 = vmatpush3.msra.mxu0 %v7189_v3  ;;  %6763 = vmatprep.mubr.f32.mxu0 %v1797_v11 }
  0x4f   : > { %6769 = vmatpush3.msra.mxu1 %v7227_v14  ;;  %6770 = vmatprep.mubr.f32.mxu1 %v7307_v58 }
  0x50   : > { %6764 = vmatmul.mubr.f32.vlgmr.msra.gmra.mxu0 %v1807_v15  ;;  %6771 = vmatmul.mubr.f32.vlgmr.msra.gmra.mxu1 %v7312_v59 }
  0x51   : > { %6773 = vmatprep.subr.mxu0 %v7193_v4  ;;  %6780 = vmatprep.subr.mxu1 %v7187_v2 }
  0x52   : > { %6774 = vmatpush3.msra.mxu0 %v7193_v4  ;;  %6781 = vmatpush3.msra.mxu1 %v7187_v2 }
  0x53   : > { %6775 = vmatprep.subr.mxu0 %v7196_v5  ;;  %6782 = vmatprep.subr.mxu1 %v7189_v3 }
  0x54   : > { %6776 = vmatpush3.msra.mxu0 %v7196_v5  ;;  %6777 = vmatprep.mubr.f32.mxu0 %v1794_v60 }
  0x55   : > { %6783 = vmatpush3.msra.mxu1 %v7189_v3  ;;  %6784 = vmatprep.mubr.f32.mxu1 %v1795_v62 }
  0x56   : > { %6778 = vmatmul.mubr.f32.vlgmr.msra.gmra.mxu0 %v1804_v61  ;;  %6785 = vmatmul.mubr.f32.vlgmr.msra.gmra.mxu1 %v1805_v63 }
  0x57   : > { %6787 = vmatprep.subr.mxu0 %v7202_v6  ;;  %6794 = vmatprep.subr.mxu1 %v7187_v2 }
  0x58   : > { %6788 = vmatpush3.msra.mxu0 %v7202_v6  ;;  %6795 = vmatpush3.msra.mxu1 %v7187_v2 }
  0x59   : > { %6789 = vmatprep.subr.mxu0 %v7206_v7  ;;  %6796 = vmatprep.subr.mxu1 %v7189_v3 }
  0x5a   : > { %6790 = vmatpush3.msra.mxu0 %v7206_v7  ;;  %6791 = vmatprep.mubr.f32.mxu0 %v7307_v58 }
  0x5b   : > { %6797 = vmatpush3.msra.mxu1 %v7189_v3  ;;  %6798 = vmatprep.mubr.f32.mxu1 %v7307_v58 }
  0x5c   : > { %6792 = vmatmul.mubr.f32.vlgmr.msra.gmra.mxu0 %v7312_v59  ;;  %6799 = vmatmul.mubr.f32.vlgmr.msra.gmra.mxu1 %v7312_v59 }
  0x5d   : > { %6801 = vmatprep.subr.mxu0 %v7187_v2  ;;  %6808 = vmatprep.subr.mxu1 %v7225_v13 }
  0x5e   : > { %6802 = vmatpush3.msra.mxu0 %v7187_v2  ;;  %6809 = vmatpush3.msra.mxu1 %v7225_v13 }
  0x5f   : > { %6803 = vmatprep.subr.mxu0 %v7189_v3  ;;  %6810 = vmatprep.subr.mxu1 %v7227_v14 }
  0x60   : > { %6804 = vmatpush3.msra.mxu0 %v7189_v3  ;;  %6805 = vmatprep.mubr.f32.mxu0 %v2305_v27 }
  0x61   : > { %6811 = vmatpush3.msra.mxu1 %v7227_v14  ;;  %6812 = vmatprep.mubr.f32.mxu1 %v7347_v16 }
  0x62   : > { %6806 = vmatmul.mubr.f32.vlgmr.msra.gmra.mxu0 %v2315_v29  ;;  %6813 = vmatmul.mubr.f32.vlgmr.msra.gmra.mxu1 %v7352_v17 }
  0x63   : > { %6815 = vmatprep.subr.mxu0 %v7193_v4  ;;  %6822 = vmatprep.subr.mxu1 %v7187_v2 }
  0x64   : > { %6816 = vmatpush3.msra.mxu0 %v7193_v4  ;;  %6823 = vmatpush3.msra.mxu1 %v7187_v2 }
  0x65   : > { %6817 = vmatprep.subr.mxu0 %v7196_v5  ;;  %6824 = vmatprep.subr.mxu1 %v7189_v3 }
  0x66   : > { %6818 = vmatpush3.msra.mxu0 %v7196_v5  ;;  %6819 = vmatprep.mubr.f32.mxu0 %v2302_v18 }
  0x67   : > { %6825 = vmatpush3.msra.mxu1 %v7189_v3  ;;  %6826 = vmatprep.mubr.f32.mxu1 %v2303_v20 }
  0x68   : > { %6820 = vmatmul.mubr.f32.vlgmr.msra.gmra.mxu0 %v2312_v19  ;;  %6827 = vmatmul.mubr.f32.vlgmr.msra.gmra.mxu1 %v2313_v21 }
  0x69   : > { %6829 = vmatprep.subr.mxu0 %v7202_v6  ;;  %6836 = vmatprep.subr.mxu1 %v7187_v2 }
  0x6a   : > { %6830 = vmatpush3.msra.mxu0 %v7202_v6  ;;  %6837 = vmatpush3.msra.mxu1 %v7187_v2 }
  0x6b   : > { %6831 = vmatprep.subr.mxu0 %v7206_v7  ;;  %6838 = vmatprep.subr.mxu1 %v7189_v3 }
  0x6c   : > { %6832 = vmatpush3.msra.mxu0 %v7206_v7  ;;  %6833 = vmatprep.mubr.f32.mxu0 %v7347_v16 }
  0x6d   : > { %6839 = vmatpush3.msra.mxu1 %v7189_v3  ;;  %6840 = vmatprep.mubr.f32.mxu1 %v7347_v16 }
  0x6e   : > { %6834 = vmatmul.mubr.f32.vlgmr.msra.gmra.mxu0 %v7352_v17  ;;  %6841 = vmatmul.mubr.f32.vlgmr.msra.gmra.mxu1 %v7352_v17 }
  0x6f   : > { %6843 = vmatprep.subr.mxu0 %v7187_v2  ;;  %6850 = vmatprep.subr.mxu1 %v7225_v13 }
  0x70   : > { %6844 = vmatpush3.msra.mxu0 %v7187_v2  ;;  %6851 = vmatpush3.msra.mxu1 %v7225_v13  ;;  %v193_v13 = vld [vmem:[%s7678_s1] sm:$0xff] }
  0x71   : > { %6845 = vmatprep.subr.mxu0 %v7189_v3  ;;  %6852 = vmatprep.subr.mxu1 %v7227_v14 }
  0x72   : > { %6846 = vmatpush3.msra.mxu0 %v7189_v3  ;;  %6847 = vmatprep.mubr.f32.mxu0 %v2813_v38 }
  0x73   : > { %6853 = vmatpush3.msra.mxu1 %v7227_v14  ;;  %6854 = vmatprep.mubr.f32.mxu1 %v7387_v30  ;;  %v3245_v14 = vsel %vm195_vm0, %v193_v13, 0 }
  0x74   : > { %6848 = vmatmul.mubr.f32.vlgmr.msra.gmra.mxu0 %v2823_v39  ;;  %6855 = vmatmul.mubr.f32.vlgmr.msra.gmra.mxu1 %v7392_v31  ;;  %v7441_v40 = vand.u32 4294901760, %v3245_v14 }
  0x75   : > { %6857 = vmatprep.subr.mxu0 %v7193_v4  ;;  %6864 = vmatprep.subr.mxu1 %v7187_v2 }
  0x76   : > { %6858 = vmatpush3.msra.mxu0 %v7193_v4  ;;  %6865 = vmatpush3.msra.mxu1 %v7187_v2  ;;  %v7446_v4 = vsub.f32 %v3245_v14, %v7441_v40 }
  0x77   : > { %6859 = vmatprep.subr.mxu0 %v7196_v5  ;;  %6866 = vmatprep.subr.mxu1 %v7189_v3 }
  0x78   : > { %6860 = vmatpush3.msra.mxu0 %v7196_v5  ;;  %6861 = vmatprep.mubr.f32.mxu0 %v2810_v32  ;;  %v7453_v5 = vand.u32 4294901760, %v7446_v4 }
  0x79   : > { %6867 = vmatpush3.msra.mxu1 %v7189_v3  ;;  %6868 = vmatprep.mubr.f32.mxu1 %v2811_v34 }
  0x7a   : > { %6862 = vmatmul.mubr.f32.vlgmr.msra.gmra.mxu0 %v2820_v33  ;;  %6869 = vmatmul.mubr.f32.vlgmr.msra.gmra.mxu1 %v2821_v35 }
  0x7b   : > { %6871 = vmatprep.subr.mxu0 %v7202_v6  ;;  %6878 = vmatprep.subr.mxu1 %v7187_v2 }
  0x7c   : > { %6872 = vmatpush3.msra.mxu0 %v7202_v6  ;;  %6879 = vmatpush3.msra.mxu1 %v7187_v2  ;;  %v3320_v6 = vsub.f32 %v7446_v4, %v7453_v5 }
  0x7d   : > { %6873 = vmatprep.subr.mxu0 %v7206_v7  ;;  %6880 = vmatprep.subr.mxu1 %v7189_v3 }
  0x7e   : > { %6874 = vmatpush3.msra.mxu0 %v7206_v7  ;;  %6875 = vmatprep.mubr.f32.mxu0 %v7387_v30  ;;  %v7463_v2 = vand.u32 4294901760, %v3320_v6  ;;  %v194_v7 = vld [vmem:[%s7678_s1 + $0x8] sm:$0xff] }
  0x7f   : > { %6881 = vmatpush3.msra.mxu1 %v7189_v3  ;;  %6882 = vmatprep.mubr.f32.mxu1 %v7387_v30  ;;  %v3248_v42 = vsel %vm195_vm0, %v194_v7, 0 }
  0x80   : > { %6876 = vmatmul.mubr.f32.vlgmr.msra.gmra.mxu0 %v7392_v31  ;;  %6883 = vmatmul.mubr.f32.vlgmr.msra.gmra.mxu1 %v7392_v31  ;;  %v7471_v44 = vand.u32 4294901760, %v3248_v42 }
  0x81   : > { %6896 = vmatprep.mubr.f32.mxu1 %v7441_v40  ;;  %6889 = vmatprep.mubr.f32.mxu0 %v7463_v2 }
  0x82   : > { %v7474_v49 = vsub.f32 %v3248_v42, %v7471_v44 }
  0x84   : > { %v7477_v57 = vand.u32 4294901760, %v7474_v49 }
  0x86   : > { %v3330_v1 = vsub.f32 %v7474_v49, %v7477_v57 }
  0x88   : > { %v7487_v18 = vand.u32 4294901760, %v3330_v1 }
  0xda   : > { %v6646_v3 = vpop.f32.mrf.mxu1 }
  0xdc   : > { %v366_v41 = vpop.f32.mrf.mxu1 }
  0xdd   : > { %v6639_v45 = vpop.f32.mrf.mxu0 }
  0xde   : > { %v6660_v43 = vpop.f32.mrf.mxu1  ;;  %v373_v48 = vadd.f32 %v6646_v3, %v6639_v45 }
  0xdf   : > { %v275_v46 = vpop.f32.mrf.mxu0 }
  0xe0   : > { %v530_v47 = vpop.f32.mrf.mxu1  ;;  %v367_v51 = vadd.f32 %v366_v41, %v275_v46 }
  0xe3   : > { %v6653_v50 = vpop.f32.mrf.mxu0 }
  0xe4   : > { %v456_v52 = vadd.f32 %v6653_v50, %v373_v48 }
  0xe5   : > { %v448_v53 = vpop.f32.mrf.mxu0  ;;  %v6674_v54 = vpop.f32.mrf.mxu1 }
  0xe6   : > { %v539_v55 = vadd.f32 %v6660_v43, %v456_v52  ;;  %v449_v56 = vadd.f32 %v448_v53, %v367_v51 }
  0xe7   : > { %v6667_v58 = vpop.f32.mrf.mxu0  ;;  %v694_v61 = vpop.f32.mrf.mxu1 }
  0xe8   : > { %v531_v59 = vadd.f32 %v530_v47, %v449_v56  ;;  %v622_v60 = vadd.f32 %v6667_v58, %v539_v55 }
  0xe9   : > { %v615_v62 = vpop.f32.mrf.mxu0 }
  0xea   : > { %v701_v63 = vadd.f32 %v6674_v54, %v622_v60  ;;  %v616_v0 = vadd.f32 %v615_v62, %v531_v59 }
  0xec   : > { %v7481_v8 = vand.u32 4294901760, %v701_v63  ;;  %v695_v9 = vadd.f32 %v694_v61, %v616_v0  ;;  %v6681_v10 = vpop.f32.mrf.mxu0  ;;  %v6688_v11 = vpop.f32.mrf.mxu1 }
  0xed   : > { %v881_v21 = vadd.f32 %v6688_v11, %v6681_v10 }
  0xee   : > { %v3367_v12 = vsub.f32 %v701_v63, %v7481_v8  ;;  %v7484_v15 = vand.u32 4294901760, %v695_v9  ;;  %v783_v16 = vpop.f32.mrf.mxu0  ;;  %v874_v17 = vpop.f32.mrf.mxu1  ;;  %6885 = vmatprep.subr.mxu0 %v7481_v8 }
  0xef   : > { %6886 = vmatpush3.msra.mxu0 %v7481_v8  ;;  %v875_v26 = vadd.f32 %v874_v17, %v783_v16 }
  0xf0   : > { %v3374_v19 = vsub.f32 %v695_v9, %v7484_v15  ;;  %6887 = vmatprep.subr.mxu0 %v7484_v15  ;;  %v3368_v20 = vand.u32 4294901760, %v3367_v12 }
  0xf1   : > { %6888 = vmatpush3.msra.mxu0 %v7484_v15 }
  0xf2   : > { %v6695_v22 = vpop.f32.mrf.mxu0  ;;  %v6702_v23 = vpop.f32.mrf.mxu1  ;;  %6899 = vmatprep.subr.mxu0 %v3367_v12  ;;  %6890 = vmatmul.mubr.f32.vlgmr.msra.gmra.mxu0 %v7487_v18  ;;  %v3369_v24 = vsub.f32 %v3367_v12, %v3368_v20  ;;  %v3375_v25 = vand.u32 4294901760, %v3374_v19 }
  0xf3   : > { %v964_v27 = vadd.f32 %v6695_v22, %v881_v21  ;;  %6900 = vmatpush3.msra.mxu0 %v3367_v12  ;;  %6903 = vmatprep.mubr.f32.mxu0 %v7446_v4 }
  0xf4   : > { %v956_v28 = vpop.f32.mrf.mxu0  ;;  %v1038_v29 = vpop.f32.mrf.mxu1  ;;  %6901 = vmatprep.subr.mxu0 %v3374_v19  ;;  %v3370_v30 = vand.u32 4294901760, %v3369_v24  ;;  %v3376_v31 = vsub.f32 %v3374_v19, %v3375_v25 }
  0xf5   : > { %v1047_v32 = vadd.f32 %v6702_v23, %v964_v27  ;;  %v957_v33 = vadd.f32 %v956_v28, %v875_v26  ;;  %6902 = vmatpush3.msra.mxu0 %v3374_v19 }
  0xf6   : > { %6892 = vmatprep.subr.mxu1 %v3370_v30  ;;  %6913 = vmatprep.subr.mxu0 %v3368_v20  ;;  %v3377_v34 = vand.u32 4294901760, %v3376_v31 }
  0xf7   : > { %v1039_v35 = vadd.f32 %v1038_v29, %v957_v33  ;;  %6893 = vmatpush3.msra.mxu1 %v3370_v30  ;;  %6904 = vmatmul.mubr.f32.vlgmr.msra.gmra.mxu0 %v7474_v49 }
  0xf8   : > { %v6709_v36 = vpop.f32.mrf.mxu0  ;;  %v6716_v37 = vpop.f32.mrf.mxu1  ;;  %6914 = vmatpush3.msra.mxu0 %v3368_v20  ;;  %6894 = vmatprep.subr.mxu1 %v3377_v34 }
  0xf9   : > { %v1130_v38 = vadd.f32 %v6709_v36, %v1047_v32  ;;  %6915 = vmatprep.subr.mxu0 %v3375_v25  ;;  %6895 = vmatpush3.msra.mxu1 %v3377_v34 }
  0xfa   : > { %v1123_v39 = vpop.f32.mrf.mxu0  ;;  %v1202_v13 = vpop.f32.mrf.mxu1  ;;  %6916 = vmatpush3.msra.mxu0 %v3375_v25  ;;  %6897 = vmatmul.mubr.f32.vlgmr.msra.gmra.mxu1 %v7471_v44 }
  0xfb   : > { %v1209_v14 = vadd.f32 %v6716_v37, %v1130_v38  ;;  %v1124_v6 = vadd.f32 %v1123_v39, %v1039_v35  ;;  %6906 = vmatprep.subr.mxu1 %v7481_v8  ;;  %6917 = vmatprep.mubr.f32.mxu0 %v7441_v40 }
  0xfc   : > { %6907 = vmatpush3.msra.mxu1 %v7481_v8  ;;  %6918 = vmatmul.mubr.f32.vlgmr.msra.gmra.mxu0 %v7471_v44 }
  0xfd   : > { %v7501_v7 = vand.u32 4294901760, %v1209_v14  ;;  %v1203_v3 = vadd.f32 %v1202_v13, %v1124_v6  ;;  %6908 = vmatprep.subr.mxu1 %v7484_v15  ;;  %6910 = vmatprep.mubr.f32.mxu1 %v7453_v5 }
  0xfe   : > { %v6723_v41 = vpop.f32.mrf.mxu0  ;;  %v6730_v42 = vpop.f32.mrf.mxu1  ;;  %6909 = vmatpush3.msra.mxu1 %v7484_v15  ;;  %6931 = vmatprep.mubr.f32.mxu0 %v7463_v2 }
  0xff   : > { %v3869_v43 = vsub.f32 %v1209_v14, %v7501_v7  ;;  %v7508_v45 = vand.u32 4294901760, %v1203_v3  ;;  %6927 = vmatprep.subr.mxu0 %v7501_v7  ;;  %6911 = vmatmul.mubr.f32.vlgmr.msra.gmra.mxu1 %v7477_v57  ;;  %v1389_v51 = vadd.f32 %v6730_v42, %v6723_v41 }
 0x100   : > { %v1291_v46 = vpop.f32.mrf.mxu0  ;;  %v1382_v47 = vpop.f32.mrf.mxu1  ;;  %6928 = vmatpush3.msra.mxu0 %v7501_v7  ;;  %6920 = vmatprep.subr.mxu1 %v7481_v8 }
 0x101   : > { %v3876_v48 = vsub.f32 %v1203_v3, %v7508_v45  ;;  %6929 = vmatprep.subr.mxu0 %v7508_v45  ;;  %6921 = vmatpush3.msra.mxu1 %v7481_v8  ;;  %v3870_v50 = vand.u32 4294901760, %v3869_v43  ;;  %v1383_v56 = vadd.f32 %v1382_v47, %v1291_v46 }
 0x102   : > { %6930 = vmatpush3.msra.mxu0 %v7508_v45  ;;  %6922 = vmatprep.subr.mxu1 %v7484_v15 }
 0x103   : > { %6941 = vmatprep.subr.mxu0 %v3869_v43  ;;  %6932 = vmatmul.mubr.f32.vlgmr.msra.gmra.mxu0 %v7487_v18  ;;  %v3871_v52 = vsub.f32 %v3869_v43, %v3870_v50  ;;  %v3877_v53 = vand.u32 4294901760, %v3876_v48 }
 0x104   : > { %v6737_v54 = vpop.f32.mrf.mxu0  ;;  %v6744_v55 = vpop.f32.mrf.mxu1  ;;  %6942 = vmatpush3.msra.mxu0 %v3869_v43  ;;  %6923 = vmatpush3.msra.mxu1 %v7484_v15 }
 0x105   : > { %v1472_v58 = vadd.f32 %v6737_v54, %v1389_v51  ;;  %6943 = vmatprep.subr.mxu0 %v3876_v48  ;;  %6924 = vmatprep.mubr.f32.mxu1 %v7441_v40  ;;  %v3872_v59 = vand.u32 4294901760, %v3871_v52  ;;  %v3878_v60 = vsub.f32 %v3876_v48, %v3877_v53 }
 0x106   : > { %v1464_v61 = vpop.f32.mrf.mxu0  ;;  %v1546_v62 = vpop.f32.mrf.mxu1  ;;  %6944 = vmatpush3.msra.mxu0 %v3876_v48  ;;  %6925 = vmatmul.mubr.f32.vlgmr.msra.gmra.mxu1 %v7471_v44 }
 0x107   : > { %v1555_v63 = vadd.f32 %v6744_v55, %v1472_v58  ;;  %v1465_v0 = vadd.f32 %v1464_v61, %v1383_v56  ;;  %6934 = vmatprep.subr.mxu1 %v3872_v59  ;;  %6945 = vmatprep.mubr.f32.mxu0 %v7446_v4  ;;  %v3879_v1 = vand.u32 4294901760, %v3878_v60 }
 0x108   : > { %6955 = vmatprep.subr.mxu0 %v3870_v50  ;;  %6935 = vmatpush3.msra.mxu1 %v3872_v59 }
 0x109   : > { %v1547_v8 = vadd.f32 %v1546_v62, %v1465_v0  ;;  %6946 = vmatmul.mubr.f32.vlgmr.msra.gmra.mxu0 %v7474_v49  ;;  %6936 = vmatprep.subr.mxu1 %v3879_v1 }
 0x10a   : > { %v6751_v9 = vpop.f32.mrf.mxu0  ;;  %v6758_v10 = vpop.f32.mrf.mxu1  ;;  %6956 = vmatpush3.msra.mxu0 %v3870_v50  ;;  %6937 = vmatpush3.msra.mxu1 %v3879_v1 }
 0x10b   : > { %v1638_v11 = vadd.f32 %v6751_v9, %v1555_v63  ;;  %6957 = vmatprep.subr.mxu0 %v3877_v53  ;;  %6938 = vmatprep.mubr.f32.mxu1 %v7441_v40 }
 0x10c   : > { %v1631_v12 = vpop.f32.mrf.mxu0  ;;  %v1710_v15 = vpop.f32.mrf.mxu1  ;;  %6958 = vmatpush3.msra.mxu0 %v3877_v53  ;;  %6939 = vmatmul.mubr.f32.vlgmr.msra.gmra.mxu1 %v7471_v44 }
 0x10d   : > { %v1717_v16 = vadd.f32 %v6758_v10, %v1638_v11  ;;  %v1632_v17 = vadd.f32 %v1631_v12, %v1547_v8  ;;  %6948 = vmatprep.subr.mxu1 %v7501_v7  ;;  %6959 = vmatprep.mubr.f32.mxu0 %v7441_v40 }
 0x10e   : > { %6949 = vmatpush3.msra.mxu1 %v7501_v7  ;;  %6960 = vmatmul.mubr.f32.vlgmr.msra.gmra.mxu0 %v7471_v44 }
 0x10f   : > { %v7531_v19 = vand.u32 4294901760, %v1717_v16  ;;  %v1711_v20 = vadd.f32 %v1710_v15, %v1632_v17  ;;  %6950 = vmatprep.subr.mxu1 %v7508_v45  ;;  %6952 = vmatprep.mubr.f32.mxu1 %v7453_v5 }
 0x110   : > { %v6765_v21 = vpop.f32.mrf.mxu0  ;;  %v6772_v22 = vpop.f32.mrf.mxu1  ;;  %6951 = vmatpush3.msra.mxu1 %v7508_v45  ;;  %6973 = vmatprep.mubr.f32.mxu0 %v7463_v2 }
 0x111   : > { %v4371_v23 = vsub.f32 %v1717_v16, %v7531_v19  ;;  %v7538_v24 = vand.u32 4294901760, %v1711_v20  ;;  %6969 = vmatprep.subr.mxu0 %v7531_v19  ;;  %6953 = vmatmul.mubr.f32.vlgmr.msra.gmra.mxu1 %v7477_v57  ;;  %v1897_v29 = vadd.f32 %v6772_v22, %v6765_v21 }
 0x112   : > { %v1799_v25 = vpop.f32.mrf.mxu0  ;;  %v1890_v26 = vpop.f32.mrf.mxu1  ;;  %6970 = vmatpush3.msra.mxu0 %v7531_v19  ;;  %6962 = vmatprep.subr.mxu1 %v7501_v7 }
 0x113   : > { %v4378_v27 = vsub.f32 %v1711_v20, %v7538_v24  ;;  %6971 = vmatprep.subr.mxu0 %v7538_v24  ;;  %6963 = vmatpush3.msra.mxu1 %v7501_v7  ;;  %v4372_v28 = vand.u32 4294901760, %v4371_v23  ;;  %v1891_v34 = vadd.f32 %v1890_v26, %v1799_v25 }
 0x114   : > { %6972 = vmatpush3.msra.mxu0 %v7538_v24  ;;  %6964 = vmatprep.subr.mxu1 %v7508_v45 }
 0x115   : > { %6983 = vmatprep.subr.mxu0 %v4371_v23  ;;  %6974 = vmatmul.mubr.f32.vlgmr.msra.gmra.mxu0 %v7487_v18  ;;  %v4373_v30 = vsub.f32 %v4371_v23, %v4372_v28  ;;  %v4379_v31 = vand.u32 4294901760, %v4378_v27 }
 0x116   : > { %v6779_v32 = vpop.f32.mrf.mxu0  ;;  %v6786_v33 = vpop.f32.mrf.mxu1  ;;  %6984 = vmatpush3.msra.mxu0 %v4371_v23  ;;  %6965 = vmatpush3.msra.mxu1 %v7508_v45 }
 0x117   : > { %v1980_v35 = vadd.f32 %v6779_v32, %v1897_v29  ;;  %6985 = vmatprep.subr.mxu0 %v4378_v27  ;;  %6966 = vmatprep.mubr.f32.mxu1 %v7441_v40  ;;  %v4374_v36 = vand.u32 4294901760, %v4373_v30  ;;  %v4380_v37 = vsub.f32 %v4378_v27, %v4379_v31 }
 0x118   : > { %v1972_v38 = vpop.f32.mrf.mxu0  ;;  %v2054_v39 = vpop.f32.mrf.mxu1  ;;  %6986 = vmatpush3.msra.mxu0 %v4378_v27  ;;  %6967 = vmatmul.mubr.f32.vlgmr.msra.gmra.mxu1 %v7471_v44 }
 0x119   : > { %v2063_v13 = vadd.f32 %v6786_v33, %v1980_v35  ;;  %v1973_v14 = vadd.f32 %v1972_v38, %v1891_v34  ;;  %6976 = vmatprep.subr.mxu1 %v4374_v36  ;;  %6987 = vmatprep.mubr.f32.mxu0 %v7446_v4  ;;  %v4381_v6 = vand.u32 4294901760, %v4380_v37 }
 0x11a   : > { %6997 = vmatprep.subr.mxu0 %v4372_v28  ;;  %6977 = vmatpush3.msra.mxu1 %v4374_v36 }
 0x11b   : > { %v2055_v7 = vadd.f32 %v2054_v39, %v1973_v14  ;;  %6988 = vmatmul.mubr.f32.vlgmr.msra.gmra.mxu0 %v7474_v49  ;;  %6978 = vmatprep.subr.mxu1 %v4381_v6 }
 0x11c   : > { %v6793_v3 = vpop.f32.mrf.mxu0  ;;  %v6800_v41 = vpop.f32.mrf.mxu1  ;;  %6998 = vmatpush3.msra.mxu0 %v4372_v28  ;;  %6979 = vmatpush3.msra.mxu1 %v4381_v6 }
 0x11d   : > { %v2146_v42 = vadd.f32 %v6793_v3, %v2063_v13  ;;  %6999 = vmatprep.subr.mxu0 %v4379_v31  ;;  %6980 = vmatprep.mubr.f32.mxu1 %v7441_v40 }
 0x11e   : > { %v2139_v43 = vpop.f32.mrf.mxu0  ;;  %v2218_v45 = vpop.f32.mrf.mxu1  ;;  %7000 = vmatpush3.msra.mxu0 %v4379_v31  ;;  %6981 = vmatmul.mubr.f32.vlgmr.msra.gmra.mxu1 %v7471_v44 }
 0x11f   : > { %v2225_v46 = vadd.f32 %v6800_v41, %v2146_v42  ;;  %v2140_v47 = vadd.f32 %v2139_v43, %v2055_v7  ;;  %6990 = vmatprep.subr.mxu1 %v7531_v19  ;;  %7001 = vmatprep.mubr.f32.mxu0 %v7441_v40 }
 0x120   : > { %6991 = vmatpush3.msra.mxu1 %v7531_v19  ;;  %7002 = vmatmul.mubr.f32.vlgmr.msra.gmra.mxu0 %v7471_v44 }
 0x121   : > { %v7561_v48 = vand.u32 4294901760, %v2225_v46  ;;  %v2219_v50 = vadd.f32 %v2218_v45, %v2140_v47  ;;  %6992 = vmatprep.subr.mxu1 %v7538_v24  ;;  %6994 = vmatprep.mubr.f32.mxu1 %v7453_v5 }
 0x122   : > { %v6807_v51 = vpop.f32.mrf.mxu0  ;;  %v6814_v52 = vpop.f32.mrf.mxu1  ;;  %6993 = vmatpush3.msra.mxu1 %v7538_v24  ;;  %7015 = vmatprep.mubr.f32.mxu0 %v7463_v2 }
 0x123   : > { %v4873_v53 = vsub.f32 %v2225_v46, %v7561_v48  ;;  %v7568_v54 = vand.u32 4294901760, %v2219_v50  ;;  %7011 = vmatprep.subr.mxu0 %v7561_v48  ;;  %6995 = vmatmul.mubr.f32.vlgmr.msra.gmra.mxu1 %v7477_v57  ;;  %v2405_v60 = vadd.f32 %v6814_v52, %v6807_v51 }
 0x124   : > { %v2307_v55 = vpop.f32.mrf.mxu0  ;;  %v2398_v56 = vpop.f32.mrf.mxu1  ;;  %7012 = vmatpush3.msra.mxu0 %v7561_v48  ;;  %7004 = vmatprep.subr.mxu1 %v7531_v19 }
 0x125   : > { %v4880_v58 = vsub.f32 %v2219_v50, %v7568_v54  ;;  %7013 = vmatprep.subr.mxu0 %v7568_v54  ;;  %7005 = vmatpush3.msra.mxu1 %v7531_v19  ;;  %v4874_v59 = vand.u32 4294901760, %v4873_v53  ;;  %v2399_v1 = vadd.f32 %v2398_v56, %v2307_v55 }
 0x126   : > { %7014 = vmatpush3.msra.mxu0 %v7568_v54  ;;  %7006 = vmatprep.subr.mxu1 %v7538_v24 }
 0x127   : > { %7025 = vmatprep.subr.mxu0 %v4873_v53  ;;  %7016 = vmatmul.mubr.f32.vlgmr.msra.gmra.mxu0 %v7487_v18  ;;  %v4875_v61 = vsub.f32 %v4873_v53, %v4874_v59  ;;  %v4881_v62 = vand.u32 4294901760, %v4880_v58 }
 0x128   : > { %v6821_v63 = vpop.f32.mrf.mxu0  ;;  %v6828_v0 = vpop.f32.mrf.mxu1  ;;  %7026 = vmatpush3.msra.mxu0 %v4873_v53  ;;  %7007 = vmatpush3.msra.mxu1 %v7538_v24 }
 0x129   : > { %v2488_v8 = vadd.f32 %v6821_v63, %v2405_v60  ;;  %7027 = vmatprep.subr.mxu0 %v4880_v58  ;;  %7008 = vmatprep.mubr.f32.mxu1 %v7441_v40  ;;  %v4876_v9 = vand.u32 4294901760, %v4875_v61  ;;  %v4882_v10 = vsub.f32 %v4880_v58, %v4881_v62 }
 0x12a   : > { %v2480_v11 = vpop.f32.mrf.mxu0  ;;  %v2562_v12 = vpop.f32.mrf.mxu1  ;;  %7028 = vmatpush3.msra.mxu0 %v4880_v58  ;;  %7009 = vmatmul.mubr.f32.vlgmr.msra.gmra.mxu1 %v7471_v44 }
 0x12b   : > { %v2571_v15 = vadd.f32 %v6828_v0, %v2488_v8  ;;  %v2481_v16 = vadd.f32 %v2480_v11, %v2399_v1  ;;  %7018 = vmatprep.subr.mxu1 %v4876_v9  ;;  %7029 = vmatprep.mubr.f32.mxu0 %v7446_v4  ;;  %v4883_v17 = vand.u32 4294901760, %v4882_v10 }
 0x12c   : > { %7039 = vmatprep.subr.mxu0 %v4874_v59  ;;  %7019 = vmatpush3.msra.mxu1 %v4876_v9 }
 0x12d   : > { %v2563_v19 = vadd.f32 %v2562_v12, %v2481_v16  ;;  %7030 = vmatmul.mubr.f32.vlgmr.msra.gmra.mxu0 %v7474_v49  ;;  %7020 = vmatprep.subr.mxu1 %v4883_v17 }
 0x12e   : > { %v6835_v20 = vpop.f32.mrf.mxu0  ;;  %v6842_v21 = vpop.f32.mrf.mxu1  ;;  %7040 = vmatpush3.msra.mxu0 %v4874_v59  ;;  %7021 = vmatpush3.msra.mxu1 %v4883_v17 }
 0x12f   : > { %v2654_v22 = vadd.f32 %v6835_v20, %v2571_v15  ;;  %7041 = vmatprep.subr.mxu0 %v4881_v62  ;;  %7022 = vmatprep.mubr.f32.mxu1 %v7441_v40 }
 0x130   : > { %v2647_v23 = vpop.f32.mrf.mxu0  ;;  %v2726_v24 = vpop.f32.mrf.mxu1  ;;  %7042 = vmatpush3.msra.mxu0 %v4881_v62  ;;  %7023 = vmatmul.mubr.f32.vlgmr.msra.gmra.mxu1 %v7471_v44 }
 0x131   : > { %v2733_v25 = vadd.f32 %v6842_v21, %v2654_v22  ;;  %v2648_v26 = vadd.f32 %v2647_v23, %v2563_v19  ;;  %7032 = vmatprep.subr.mxu1 %v7561_v48  ;;  %7043 = vmatprep.mubr.f32.mxu0 %v7441_v40 }
 0x132   : > { %7033 = vmatpush3.msra.mxu1 %v7561_v48  ;;  %7044 = vmatmul.mubr.f32.vlgmr.msra.gmra.mxu0 %v7471_v44 }
 0x133   : > { %v7591_v27 = vand.u32 4294901760, %v2733_v25  ;;  %v2727_v28 = vadd.f32 %v2726_v24, %v2648_v26  ;;  %7034 = vmatprep.subr.mxu1 %v7568_v54  ;;  %7036 = vmatprep.mubr.f32.mxu1 %v7453_v5 }
 0x134   : > { %v6849_v29 = vpop.f32.mrf.mxu0  ;;  %v6856_v30 = vpop.f32.mrf.mxu1  ;;  %7035 = vmatpush3.msra.mxu1 %v7568_v54  ;;  %7057 = vmatprep.mubr.f32.mxu0 %v7463_v2 }
 0x135   : > { %v5375_v31 = vsub.f32 %v2733_v25, %v7591_v27  ;;  %v7598_v32 = vand.u32 4294901760, %v2727_v28  ;;  %7053 = vmatprep.subr.mxu0 %v7591_v27  ;;  %7037 = vmatmul.mubr.f32.vlgmr.msra.gmra.mxu1 %v7477_v57  ;;  %v2913_v37 = vadd.f32 %v6856_v30, %v6849_v29 }
 0x136   : > { %v2815_v33 = vpop.f32.mrf.mxu0  ;;  %v2906_v34 = vpop.f32.mrf.mxu1  ;;  %7054 = vmatpush3.msra.mxu0 %v7591_v27  ;;  %7046 = vmatprep.subr.mxu1 %v7561_v48 }
 0x137   : > { %v5382_v35 = vsub.f32 %v2727_v28, %v7598_v32  ;;  %7055 = vmatprep.subr.mxu0 %v7598_v32  ;;  %7047 = vmatpush3.msra.mxu1 %v7561_v48  ;;  %v5376_v36 = vand.u32 4294901760, %v5375_v31  ;;  %v2907_v6 = vadd.f32 %v2906_v34, %v2815_v33 }
 0x138   : > { %7056 = vmatpush3.msra.mxu0 %v7598_v32  ;;  %7048 = vmatprep.subr.mxu1 %v7568_v54 }
 0x139   : > { %7067 = vmatprep.subr.mxu0 %v5375_v31  ;;  %7058 = vmatmul.mubr.f32.vlgmr.msra.gmra.mxu0 %v7487_v18  ;;  %v5377_v38 = vsub.f32 %v5375_v31, %v5376_v36  ;;  %v5383_v39 = vand.u32 4294901760, %v5382_v35 }
 0x13a   : > { %v6863_v13 = vpop.f32.mrf.mxu0  ;;  %v6870_v14 = vpop.f32.mrf.mxu1  ;;  %7068 = vmatpush3.msra.mxu0 %v5375_v31  ;;  %7049 = vmatpush3.msra.mxu1 %v7568_v54 }
 0x13b   : > { %v2996_v7 = vadd.f32 %v6863_v13, %v2913_v37  ;;  %7069 = vmatprep.subr.mxu0 %v5382_v35  ;;  %7050 = vmatprep.mubr.f32.mxu1 %v7441_v40  ;;  %v5378_v3 = vand.u32 4294901760, %v5377_v38  ;;  %v5384_v41 = vsub.f32 %v5382_v35, %v5383_v39 }
 0x13c   : > { %v2988_v42 = vpop.f32.mrf.mxu0  ;;  %v3070_v43 = vpop.f32.mrf.mxu1  ;;  %7070 = vmatpush3.msra.mxu0 %v5382_v35  ;;  %7051 = vmatmul.mubr.f32.vlgmr.msra.gmra.mxu1 %v7471_v44 }
 0x13d   : > { %v3079_v45 = vadd.f32 %v6870_v14, %v2996_v7  ;;  %v2989_v46 = vadd.f32 %v2988_v42, %v2907_v6  ;;  %7060 = vmatprep.subr.mxu1 %v5378_v3  ;;  %7071 = vmatprep.mubr.f32.mxu0 %v7446_v4  ;;  %v5385_v47 = vand.u32 4294901760, %v5384_v41 }
 0x13e   : > { %7081 = vmatprep.subr.mxu0 %v5376_v36  ;;  %7061 = vmatpush3.msra.mxu1 %v5378_v3 }
 0x13f   : > { %v3071_v48 = vadd.f32 %v3070_v43, %v2989_v46  ;;  %7072 = vmatmul.mubr.f32.vlgmr.msra.gmra.mxu0 %v7474_v49  ;;  %7062 = vmatprep.subr.mxu1 %v5385_v47 }
 0x140   : > { %v6877_v50 = vpop.f32.mrf.mxu0  ;;  %v6884_v51 = vpop.f32.mrf.mxu1  ;;  %7082 = vmatpush3.msra.mxu0 %v5376_v36  ;;  %7063 = vmatpush3.msra.mxu1 %v5385_v47 }
 0x141   : > { %v3162_v52 = vadd.f32 %v6877_v50, %v3079_v45  ;;  %7083 = vmatprep.subr.mxu0 %v5383_v39  ;;  %7064 = vmatprep.mubr.f32.mxu1 %v7441_v40 }
 0x142   : > { %v3155_v53 = vpop.f32.mrf.mxu0  ;;  %7084 = vmatpush3.msra.mxu0 %v5383_v39  ;;  %7065 = vmatmul.mubr.f32.vlgmr.msra.gmra.mxu1 %v7471_v44  ;;  %v3234_v56 = vpop.f32.mrf.mxu1 }
 0x143   : > { %v3241_v54 = vadd.f32 %v6884_v51, %v3162_v52  ;;  %v3156_v55 = vadd.f32 %v3155_v53, %v3071_v48  ;;  %7074 = vmatprep.subr.mxu1 %v7591_v27  ;;  %7085 = vmatprep.mubr.f32.mxu0 %v7441_v40 }
 0x144   : > { %7075 = vmatpush3.msra.mxu1 %v7591_v27  ;;  %7086 = vmatmul.mubr.f32.vlgmr.msra.gmra.mxu0 %v7471_v44 }
 0x145   : > { %v5789_v58 = vand.u32 4294901760, %v3241_v54  ;;  %v3235_v59 = vadd.f32 %v3234_v56, %v3156_v55  ;;  %7076 = vmatprep.subr.mxu1 %v7598_v32  ;;  %7078 = vmatprep.mubr.f32.mxu1 %v7453_v5 }
 0x146   : > { %7077 = vmatpush3.msra.mxu1 %v7598_v32  ;;  %7099 = vmatprep.mubr.f32.mxu0 %v7463_v2 }
 0x147   : > { %v5877_v60 = vsub.f32 %v3241_v54, %v5789_v58  ;;  %v5792_v61 = vand.u32 4294901760, %v3235_v59  ;;  %7095 = vmatprep.subr.mxu0 %v5789_v58  ;;  %7079 = vmatmul.mubr.f32.vlgmr.msra.gmra.mxu1 %v7477_v57 }
 0x148   : > { %7096 = vmatpush3.msra.mxu0 %v5789_v58  ;;  %7088 = vmatprep.subr.mxu1 %v7591_v27 }
 0x149   : > { %v5884_v62 = vsub.f32 %v3235_v59, %v5792_v61  ;;  %7097 = vmatprep.subr.mxu0 %v5792_v61  ;;  %7089 = vmatpush3.msra.mxu1 %v7591_v27  ;;  %v5878_v63 = vand.u32 4294901760, %v5877_v60 }
 0x14a   : > { %7098 = vmatpush3.msra.mxu0 %v5792_v61  ;;  %7090 = vmatprep.subr.mxu1 %v7598_v32 }
 0x14b   : > { %7109 = vmatprep.subr.mxu0 %v5877_v60  ;;  %7100 = vmatmul.mubr.f32.vlgmr.msra.gmra.mxu0 %v7487_v18  ;;  %v5879_v2 = vsub.f32 %v5877_v60, %v5878_v63  ;;  %v5885_v0 = vand.u32 4294901760, %v5884_v62 }
 0x14c   : > { %7110 = vmatpush3.msra.mxu0 %v5877_v60  ;;  %7091 = vmatpush3.msra.mxu1 %v7598_v32 }
 0x14d   : > { %7111 = vmatprep.subr.mxu0 %v5884_v62  ;;  %7092 = vmatprep.mubr.f32.mxu1 %v7441_v40  ;;  %v5880_v1 = vand.u32 4294901760, %v5879_v2  ;;  %v5886_v8 = vsub.f32 %v5884_v62, %v5885_v0 }
 0x14e   : > { %7112 = vmatpush3.msra.mxu0 %v5884_v62  ;;  %7093 = vmatmul.mubr.f32.vlgmr.msra.gmra.mxu1 %v7471_v44 }
 0x14f   : > { %7102 = vmatprep.subr.mxu1 %v5880_v1  ;;  %7113 = vmatprep.mubr.f32.mxu0 %v7446_v4  ;;  %v5887_v9 = vand.u32 4294901760, %v5886_v8 }
 0x150   : > { %7123 = vmatprep.subr.mxu0 %v5878_v63  ;;  %7103 = vmatpush3.msra.mxu1 %v5880_v1 }
 0x151   : > { %7114 = vmatmul.mubr.f32.vlgmr.msra.gmra.mxu0 %v7474_v49  ;;  %7104 = vmatprep.subr.mxu1 %v5887_v9 }
 0x152   : > { %7124 = vmatpush3.msra.mxu0 %v5878_v63  ;;  %7105 = vmatpush3.msra.mxu1 %v5887_v9 }
 0x153   : > { %7125 = vmatprep.subr.mxu0 %v5885_v0  ;;  %7106 = vmatprep.mubr.f32.mxu1 %v7441_v40 }
 0x154   : > { %7126 = vmatpush3.msra.mxu0 %v5885_v0  ;;  %7107 = vmatmul.mubr.f32.vlgmr.msra.gmra.mxu1 %v7471_v44 }
 0x155   : > { %7116 = vmatprep.subr.mxu1 %v5789_v58  ;;  %7120 = vmatprep.mubr.f32.mxu1 %v7453_v5 }
 0x156   : > { %7117 = vmatpush3.msra.mxu1 %v5789_v58  ;;  %7127 = vmatprep.mubr.f32.mxu0 %v7441_v40 }
 0x157   : > { %7118 = vmatprep.subr.mxu1 %v5792_v61  ;;  %7128 = vmatmul.mubr.f32.vlgmr.msra.gmra.mxu0 %v7471_v44 }
 0x158   : > { %7119 = vmatpush3.msra.mxu1 %v5792_v61 }
 0x159   : > { %7121 = vmatmul.mubr.f32.vlgmr.msra.gmra.mxu1 %v7477_v57  ;;  %7130 = vmatprep.subr.mxu1 %v5789_v58 }
 0x15a   : > { %7131 = vmatpush3.msra.mxu1 %v5789_v58  ;;  %7134 = vmatprep.mubr.f32.mxu1 %v7441_v40 }
 0x15b   : > { %7132 = vmatprep.subr.mxu1 %v5792_v61 }
 0x15c   : > { %7133 = vmatpush3.msra.mxu1 %v5792_v61 }
 0x15d   : > { %7135 = vmatmul.mubr.f32.vlgmr.msra.gmra.mxu1 %v7471_v44 }
 0x1b2   : > { %v6891_v4 = vpop.f32.mrf.mxu0 }
 0x1b4   : > { %v3323_v49 = vpop.f32.mrf.mxu0 }
 0x1b7   : > { %v6905_v5 = vpop.f32.mrf.mxu0 }
 0x1b9   : > { %v3496_v18 = vpop.f32.mrf.mxu0 }
 0x1ba   : > { %v6898_v10 = vpop.f32.mrf.mxu1 }
 0x1bb   : > { %v3421_v11 = vadd.f32 %v6898_v10, %v6891_v4 }
 0x1bc   : > { %v3414_v12 = vpop.f32.mrf.mxu1  ;;  %v6919_v15 = vpop.f32.mrf.mxu0 }
 0x1bd   : > { %v3504_v16 = vadd.f32 %v6905_v5, %v3421_v11  ;;  %v3415_v17 = vadd.f32 %v3414_v12, %v3323_v49 }
 0x1be   : > { %v3663_v20 = vpop.f32.mrf.mxu0 }
 0x1bf   : > { %v3497_v57 = vadd.f32 %v3496_v18, %v3415_v17  ;;  %v6912_v19 = vpop.f32.mrf.mxu1 }
 0x1c0   : > { %v3587_v21 = vadd.f32 %v6912_v19, %v3504_v16 }
 0x1c1   : > { %v3578_v40 = vpop.f32.mrf.mxu1 }
 0x1c2   : > { %v3579_v22 = vadd.f32 %v3578_v40, %v3497_v57  ;;  %v3670_v23 = vadd.f32 %v6919_v15, %v3587_v21 }
 0x1c3   : > { %v6933_v24 = vpop.f32.mrf.mxu0 }
 0x1c4   : > { %v3664_v44 = vadd.f32 %v3663_v20, %v3579_v22 }
 0x1c5   : > { %v3825_v25 = vpop.f32.mrf.mxu0 }
 0x1c6   : > { %v6926_v26 = vpop.f32.mrf.mxu1 }
 0x1c7   : > { %v3749_v27 = vadd.f32 %v6926_v26, %v3670_v23 }
 0x1c8   : > { %v3742_v28 = vpop.f32.mrf.mxu1 }
 0x1c9   : > { %6263 = vst.msk [vmem:[%s7648_s29 + $0x8] sm:$0xff] %vm195_vm0, %v3749_v27  ;;  %v3743_v29 = vadd.f32 %v3742_v28, %v3664_v44  ;;  %v6947_v30 = vpop.f32.mrf.mxu0 }
 0x1cb   : > { %6262 = vst.msk [vmem:[%s7648_s29] sm:$0xff] %vm195_vm0, %v3743_v29  ;;  %v3998_v31 = vpop.f32.mrf.mxu0 }
 0x1cc   : > { %v6940_v32 = vpop.f32.mrf.mxu1 }
 0x1cd   : > { %v3923_v33 = vadd.f32 %v6940_v32, %v6933_v24 }
 0x1ce   : > { %v3916_v34 = vpop.f32.mrf.mxu1  ;;  %v6961_v35 = vpop.f32.mrf.mxu0 }
 0x1cf   : > { %v4006_v36 = vadd.f32 %v6947_v30, %v3923_v33  ;;  %v3917_v37 = vadd.f32 %v3916_v34, %v3825_v25 }
 0x1d0   : > { %v4165_v13 = vpop.f32.mrf.mxu0 }
 0x1d1   : > { %v3999_v38 = vadd.f32 %v3998_v31, %v3917_v37  ;;  %v6954_v39 = vpop.f32.mrf.mxu1 }
 0x1d2   : > { %v4089_v14 = vadd.f32 %v6954_v39, %v4006_v36 }
 0x1d3   : > { %v4080_v6 = vpop.f32.mrf.mxu1 }
 0x1d4   : > { %v4081_v7 = vadd.f32 %v4080_v6, %v3999_v38  ;;  %v4172_v3 = vadd.f32 %v6961_v35, %v4089_v14 }
 0x1d5   : > { %v6975_v41 = vpop.f32.mrf.mxu0 }
 0x1d6   : > { %v4166_v42 = vadd.f32 %v4165_v13, %v4081_v7 }
 0x1d7   : > { %v4327_v43 = vpop.f32.mrf.mxu0 }
 0x1d8   : > { %v6968_v45 = vpop.f32.mrf.mxu1 }
 0x1d9   : > { %v4251_v46 = vadd.f32 %v6968_v45, %v4172_v3 }
 0x1da   : > { %v4244_v47 = vpop.f32.mrf.mxu1 }
 0x1db   : > { %6265 = vst.msk [vmem:[%s7648_s29 + $0x18] sm:$0xff] %vm195_vm0, %v4251_v46  ;;  %v4245_v48 = vadd.f32 %v4244_v47, %v4166_v42  ;;  %v6989_v50 = vpop.f32.mrf.mxu0 }
 0x1dd   : > { %6264 = vst.msk [vmem:[%s7648_s29 + $0x10] sm:$0xff] %vm195_vm0, %v4245_v48  ;;  %v4500_v51 = vpop.f32.mrf.mxu0 }
 0x1de   : > { %v6982_v52 = vpop.f32.mrf.mxu1 }
 0x1df   : > { %v4425_v53 = vadd.f32 %v6982_v52, %v6975_v41 }
 0x1e0   : > { %v4418_v54 = vpop.f32.mrf.mxu1  ;;  %v7003_v55 = vpop.f32.mrf.mxu0 }
 0x1e1   : > { %v4508_v56 = vadd.f32 %v6989_v50, %v4425_v53  ;;  %v4419_v58 = vadd.f32 %v4418_v54, %v4327_v43 }
 0x1e2   : > { %v4667_v61 = vpop.f32.mrf.mxu0 }
 0x1e3   : > { %v4501_v59 = vadd.f32 %v4500_v51, %v4419_v58  ;;  %v6996_v60 = vpop.f32.mrf.mxu1 }
 0x1e4   : > { %v4591_v62 = vadd.f32 %v6996_v60, %v4508_v56 }
 0x1e5   : > { %v4582_v63 = vpop.f32.mrf.mxu1 }
 0x1e6   : > { %v4583_v2 = vadd.f32 %v4582_v63, %v4501_v59  ;;  %v4674_v0 = vadd.f32 %v7003_v55, %v4591_v62 }
 0x1e7   : > { %v7017_v1 = vpop.f32.mrf.mxu0 }
 0x1e8   : > { %v4668_v8 = vadd.f32 %v4667_v61, %v4583_v2 }
 0x1e9   : > { %v4829_v9 = vpop.f32.mrf.mxu0 }
 0x1ea   : > { %v7010_v4 = vpop.f32.mrf.mxu1 }
 0x1eb   : > { %v4753_v49 = vadd.f32 %v7010_v4, %v4674_v0 }
 0x1ec   : > { %v4746_v5 = vpop.f32.mrf.mxu1 }
 0x1ed   : > { %6267 = vst.msk [vmem:[%s7648_s29 + $0x28] sm:$0xff] %vm195_vm0, %v4753_v49  ;;  %v4747_v18 = vadd.f32 %v4746_v5, %v4668_v8  ;;  %v7031_v10 = vpop.f32.mrf.mxu0 }
 0x1ef   : > { %6266 = vst.msk [vmem:[%s7648_s29 + $0x20] sm:$0xff] %vm195_vm0, %v4747_v18  ;;  %v5002_v11 = vpop.f32.mrf.mxu0 }
 0x1f0   : > { %v7024_v12 = vpop.f32.mrf.mxu1 }
 0x1f1   : > { %v4927_v15 = vadd.f32 %v7024_v12, %v7017_v1 }
 0x1f2   : > { %v4920_v16 = vpop.f32.mrf.mxu1  ;;  %v7045_v17 = vpop.f32.mrf.mxu0 }
 0x1f3   : > { %v5010_v57 = vadd.f32 %v7031_v10, %v4927_v15  ;;  %v4921_v19 = vadd.f32 %v4920_v16, %v4829_v9 }
 0x1f4   : > { %v5169_v40 = vpop.f32.mrf.mxu0 }
 0x1f5   : > { %v5003_v20 = vadd.f32 %v5002_v11, %v4921_v19  ;;  %v7038_v21 = vpop.f32.mrf.mxu1 }
 0x1f6   : > { %v5093_v22 = vadd.f32 %v7038_v21, %v5010_v57 }
 0x1f7   : > { %v5084_v23 = vpop.f32.mrf.mxu1 }
 0x1f8   : > { %v5085_v24 = vadd.f32 %v5084_v23, %v5003_v20  ;;  %v5176_v44 = vadd.f32 %v7045_v17, %v5093_v22 }
 0x1f9   : > { %v7059_v25 = vpop.f32.mrf.mxu0 }
 0x1fa   : > { %v5170_v26 = vadd.f32 %v5169_v40, %v5085_v24 }
 0x1fb   : > { %v5331_v27 = vpop.f32.mrf.mxu0 }
 0x1fc   : > { %v7052_v28 = vpop.f32.mrf.mxu1 }
 0x1fd   : > { %v5255_v29 = vadd.f32 %v7052_v28, %v5176_v44 }
 0x1fe   : > { %v5248_v30 = vpop.f32.mrf.mxu1 }
 0x1ff   : > { %6269 = vst.msk [vmem:[%s7648_s29 + $0x38] sm:$0xff] %vm195_vm0, %v5255_v29  ;;  %v5249_v31 = vadd.f32 %v5248_v30, %v5170_v26  ;;  %v7073_v32 = vpop.f32.mrf.mxu0 }
 0x201   : > { %6268 = vst.msk [vmem:[%s7648_s29 + $0x30] sm:$0xff] %vm195_vm0, %v5249_v31  ;;  %v5504_v33 = vpop.f32.mrf.mxu0 }
 0x202   : > { %v7066_v34 = vpop.f32.mrf.mxu1 }
 0x203   : > { %v5429_v35 = vadd.f32 %v7066_v34, %v7059_v25 }
 0x204   : > { %v5422_v36 = vpop.f32.mrf.mxu1  ;;  %v7087_v37 = vpop.f32.mrf.mxu0 }
 0x205   : > { %v5512_v38 = vadd.f32 %v7073_v32, %v5429_v35  ;;  %v5423_v39 = vadd.f32 %v5422_v36, %v5331_v27 }
 0x206   : > { %v5671_v6 = vpop.f32.mrf.mxu0 }
 0x207   : > { %v5505_v13 = vadd.f32 %v5504_v33, %v5423_v39  ;;  %v7080_v14 = vpop.f32.mrf.mxu1 }
 0x208   : > { %v5595_v7 = vadd.f32 %v7080_v14, %v5512_v38 }
 0x209   : > { %v5586_v3 = vpop.f32.mrf.mxu1 }
 0x20a   : > { %v5587_v41 = vadd.f32 %v5586_v3, %v5505_v13  ;;  %v5678_v42 = vadd.f32 %v7087_v37, %v5595_v7 }
 0x20b   : > { %v7101_v43 = vpop.f32.mrf.mxu0 }
 0x20c   : > { %v5672_v45 = vadd.f32 %v5671_v6, %v5587_v41 }
 0x20d   : > { %v5833_v46 = vpop.f32.mrf.mxu0 }
 0x20e   : > { %v7094_v47 = vpop.f32.mrf.mxu1 }
 0x20f   : > { %v5757_v48 = vadd.f32 %v7094_v47, %v5678_v42 }
 0x210   : > { %v5750_v50 = vpop.f32.mrf.mxu1 }
 0x211   : > { %6271 = vst.msk [vmem:[%s7648_s29 + $0x48] sm:$0xff] %vm195_vm0, %v5757_v48  ;;  %v5751_v51 = vadd.f32 %v5750_v50, %v5672_v45  ;;  %v7115_v52 = vpop.f32.mrf.mxu0 }
 0x213   : > { %6270 = vst.msk [vmem:[%s7648_s29 + $0x40] sm:$0xff] %vm195_vm0, %v5751_v51  ;;  %v6006_v55 = vpop.f32.mrf.mxu0 }
 0x214   : > { %v7108_v53 = vpop.f32.mrf.mxu1 }
 0x215   : > { %v5931_v54 = vadd.f32 %v7108_v53, %v7101_v43 }
 0x216   : > { %v5924_v56 = vpop.f32.mrf.mxu1 }
 0x217   : > { %v6014_v58 = vadd.f32 %v7115_v52, %v5931_v54  ;;  %v5925_v59 = vadd.f32 %v5924_v56, %v5833_v46  ;;  %v7129_v62 = vpop.f32.mrf.mxu0 }
 0x219   : > { %v6007_v60 = vadd.f32 %v6006_v55, %v5925_v59  ;;  %v7122_v61 = vpop.f32.mrf.mxu1  ;;  %v6173_v8 = vpop.f32.mrf.mxu0 }
 0x21a   : > { %v6097_v63 = vadd.f32 %v7122_v61, %v6014_v58 }
 0x21b   : > { %v6088_v2 = vpop.f32.mrf.mxu1 }
 0x21c   : > { %v6180_v0 = vadd.f32 %v7129_v62, %v6097_v63  ;;  %v6089_v1 = vadd.f32 %v6088_v2, %v6007_v60 }
 0x21d   : > { %v7136_v9 = vpop.f32.mrf.mxu1 }
 0x21e   : > { %v6174_v4 = vadd.f32 %v6173_v8, %v6089_v1  ;;  %v6259_v49 = vadd.f32 %v7136_v9, %v6180_v0 }
 0x21f   : > { %v6252_v5 = vpop.f32.mrf.mxu1 }
 0x220   : > { %6273 = vst.msk [vmem:[%s7648_s29 + $0x58] sm:$0xff] %vm195_vm0, %v6259_v49  ;;  %v6253_v18 = vadd.f32 %v6252_v5, %v6174_v4 }
 0x222   : > { %6272 = vst.msk [vmem:[%s7648_s29 + $0x50] sm:$0xff] %vm195_vm0, %v6253_v18 }
 0x223 PF: > { %s13_s12 = sadd.s32 1, %s7151_s12  }
 0x224   : > { %p10_p4 = scmp.ge.s32.totalorder %s13_s12, 6  }
 0x226   :  { %12 = sbr.rel (!%p10_p4) target bundleno = 1 (0x1), region = 62 }

</bundles_post_ra>
